<compile_context>
chip_gen: v5e
topology: v5e:2x2
jax: 0.10.0
libtpu: 0.0.40
codegen_flags: <defaults>
</compile_context>

<pallas_src>
import functools

import jax
import jax.numpy as jnp
import numpy as np
from jax.experimental import pallas as pl
from jax.experimental.pallas import tpu as pltpu


# ----------------------------------------------------------------------------
# Linear kernel: y = x @ w.T + b, tiled over rows (M).
# ----------------------------------------------------------------------------
def _linear_kernel(x_ref, w_ref, b_ref, o_ref):
    y = jax.lax.dot_general(
        x_ref[...], w_ref[...],
        dimension_numbers=(((1,), (1,)), ((), ())),   # contract K of both
        preferred_element_type=jnp.float32,
    )
    o_ref[...] = y + b_ref[...]


def linear_pallas(x, w, b, *, tm=512):
    """x: (M, K), w: (O, K), b: (O,) -> (M, O)   (== torch nn.Linear)."""
    M, K = x.shape
    O = w.shape[0]
    tm = min(tm, M)
    b2 = b.reshape(1, O)
    return pl.pallas_call(
        _linear_kernel,
        out_shape=jax.ShapeDtypeStruct((M, O), jnp.float32),
        grid=(pl.cdiv(M, tm),),
        in_specs=[
            pl.BlockSpec((tm, K), lambda i: (i, 0)),
            pl.BlockSpec((O, K), lambda i: (0, 0)),    # resident weights
            pl.BlockSpec((1, O), lambda i: (0, 0)),    # resident bias
        ],
        out_specs=pl.BlockSpec((tm, O), lambda i: (i, 0)),
        compiler_params=pltpu.CompilerParams(
            dimension_semantics=("parallel",)),
    )(x, w, b2)


# ----------------------------------------------------------------------------
# Attention kernel: one grid step per batch element, all heads per step.
# ----------------------------------------------------------------------------
def _attn_kernel(*refs, num_heads, dim, scale, use_rel_pos):
    if use_rel_pos:
        qkv_ref, relh_ref, relw_ref, eh_ref, ew_ref, o_ref = refs
    else:
        qkv_ref, o_ref = refs
        relh_ref = relw_ref = eh_ref = ew_ref = None
    hd = dim // num_heads

    for h in range(num_heads):                       # static unroll over heads
        q = qkv_ref[0, :, h * hd:(h + 1) * hd]                       # (N, hd)
        k = qkv_ref[0, :, dim + h * hd:dim + (h + 1) * hd]           # (N, hd)
        v = qkv_ref[0, :, 2 * dim + h * hd:2 * dim + (h + 1) * hd]   # (N, hd)

        # attn = (q * scale) @ k^T   (MXU)
        attn = jax.lax.dot_general(
            q * scale, k,
            dimension_numbers=(((1,), (1,)), ((), ())),
            preferred_element_type=jnp.float32,
        )                                                            # (N, N)

        if use_rel_pos:
            # bias[n, m] = rel_h[n, m // W] + rel_w[n, m % W]
            # expanded with constant 0/1 matrices on the MXU.
            Hk = eh_ref.shape[0]
            Wk = ew_ref.shape[0]
            rh = relh_ref[0, :, h * Hk:(h + 1) * Hk]                 # (N, Hk)
            rw = relw_ref[0, :, h * Wk:(h + 1) * Wk]                 # (N, Wk)
            attn = (attn
                    + jnp.dot(rh, eh_ref[...], preferred_element_type=jnp.float32)
                    + jnp.dot(rw, ew_ref[...], preferred_element_type=jnp.float32))

        # numerically-stable softmax; divide moved to EUP via approx reciprocal
        m = jnp.max(attn, axis=-1, keepdims=True)
        e = jnp.exp(attn - m)
        s = jnp.sum(e, axis=-1, keepdims=True)
        num = jnp.dot(e, v, preferred_element_type=jnp.float32)      # (N, hd)
        # heads merged directly into the (N, dim) output block (torch channel order)
        o_ref[0, :, h * hd:(h + 1) * hd] = num * pl.reciprocal(s, approx=True)


def attn_pallas(qkv, rel_h, rel_w, eh, ew, *, num_heads, scale, use_rel_pos):
    """qkv: (B, N, 3*dim);  rel_h: (B, N, nh*H);  rel_w: (B, N, nh*W);
       eh: (H, N);  ew: (W, N)   ->  (B, N, dim) with heads merged."""
    B, N, three_dim = qkv.shape
    dim = three_dim // 3
    kernel = functools.partial(_attn_kernel, num_heads=num_heads, dim=dim,
                               scale=scale, use_rel_pos=use_rel_pos)
    in_specs = [pl.BlockSpec((1, N, three_dim), lambda b: (b, 0, 0))]
    args = [qkv]
    if use_rel_pos:
        Hk, Wk = eh.shape[0], ew.shape[0]
        in_specs += [
            pl.BlockSpec((1, N, num_heads * Hk), lambda b: (b, 0, 0)),
            pl.BlockSpec((1, N, num_heads * Wk), lambda b: (b, 0, 0)),
            pl.BlockSpec((Hk, N), lambda b: (0, 0)),   # resident constants
            pl.BlockSpec((Wk, N), lambda b: (0, 0)),
        ]
        args += [rel_h, rel_w, eh, ew]
    return pl.pallas_call(
        kernel,
        out_shape=jax.ShapeDtypeStruct((B, N, dim), jnp.float32),
        grid=(B,),
        in_specs=in_specs,
        out_specs=pl.BlockSpec((1, N, dim), lambda b: (b, 0, 0)),
        compiler_params=pltpu.CompilerParams(
            dimension_semantics=("parallel",),
            vmem_limit_bytes=32 * 1024 * 1024),
    )(*args)


# ----------------------------------------------------------------------------
# Parameter-setup glue (plain JAX)
# ----------------------------------------------------------------------------
def get_rel_pos(q_size, k_size, rel_pos):
    """JAX port of get_rel_pos (index-gather path)."""
    max_rel_dist = int(2 * max(q_size, k_size) - 1)
    if rel_pos.shape[0] != max_rel_dist:
        # TODO(synk): F.interpolate(mode='linear') resize branch not implemented
        # (not exercised: rel_pos is constructed with exactly 2*size-1 entries).
        raise NotImplementedError("rel_pos resize branch not implemented")
    q_coords = jnp.arange(q_size)[:, None] * max(k_size / q_size, 1.0)
    k_coords = jnp.arange(k_size)[None, :] * max(q_size / k_size, 1.0)
    relative_coords = (q_coords - k_coords) + (k_size - 1) * max(q_size / k_size, 1.0)
    return rel_pos[relative_coords.astype(jnp.int32)]


def multi_head_attn_pallas(x, w_qkv, b_qkv, w_proj, b_proj,
                           rel_pos_h, rel_pos_w, *, num_heads, use_rel_pos):
    B, H, W, dim = x.shape
    N = H * W
    hd = dim // num_heads
    scale = hd ** -0.5

    # qkv projection (tiled Pallas matmul).  Channel layout of the 3*dim axis is
    # [q | k | v] x [head] x [hd] (== torch reshape(B, N, 3, nh, hd)).
    qkv = linear_pallas(x.reshape(B * N, dim), w_qkv, b_qkv)       # (B*N, 3*dim)
    qkv = qkv.reshape(B, N, 3 * dim)

    if use_rel_pos:
        Rh = get_rel_pos(H, H, rel_pos_h)                          # (H, H, hd)
        Rw = get_rel_pos(W, W, rel_pos_w)                          # (W, W, hd)
        # decomposed rel-pos terms: tiny per-head einsums (MXU), O(N*(H+W)*hd)
        q = qkv[:, :, :dim].reshape(B, H, W, num_heads, hd)        # unscaled q
        rel_h = jnp.einsum('bhwnc,hkc->bhwnk', q, Rh).reshape(B, N, num_heads * H)
        rel_w = jnp.einsum('bhwnc,wkc->bhwnk', q, Rw).reshape(B, N, num_heads * W)
        # constant 0/1 expansion matrices used inside the kernel (MXU):
        # (rh @ eh)[n, m] = rel_h[n, m // W],  (rw @ ew)[n, m] = rel_w[n, m % W]
        m_idx = jnp.arange(N)
        eh = (m_idx[None, :] // W == jnp.arange(H)[:, None]).astype(jnp.float32)
        ew = (m_idx[None, :] % W == jnp.arange(W)[:, None]).astype(jnp.float32)
    else:
        rel_h = rel_w = eh = ew = None

    # attention kernel: QK^T + rel-pos bias + softmax + @V, heads merged in-kernel
    out = attn_pallas(qkv, rel_h, rel_w, eh, ew,
                      num_heads=num_heads, scale=scale, use_rel_pos=use_rel_pos)

    # output projection (tiled Pallas matmul); no head transpose needed.
    out = linear_pallas(out.reshape(B * N, dim), w_proj, b_proj)
    return out.reshape(B, H, W, dim)


# ----------------------------------------------------------------------------
# Pure-JAX reference (mirrors the PyTorch forward exactly)
# ----------------------------------------------------------------------------
def multi_head_attn_ref(x, w_qkv, b_qkv, w_proj, b_proj,
                        rel_pos_h, rel_pos_w, *, num_heads, use_rel_pos):
    B, H, W, dim = x.shape
    head_dim = dim // num_heads
    scale = head_dim ** -0.5
    qkv = x.reshape(B, H * W, dim) @ w_qkv.T + b_qkv
    qkv = (qkv.reshape(B, H * W, 3, num_heads, head_dim)
              .transpose(2, 0, 3, 1, 4)
              .reshape(3, B * num_heads, H * W, head_dim))
    q, k, v = qkv[0], qkv[1], qkv[2]
    attn = (q * scale) @ jnp.swapaxes(k, -2, -1)
    if use_rel_pos:
        Rh = get_rel_pos(H, H, rel_pos_h)
        Rw = get_rel_pos(W, W, rel_pos_w)
        Bq = q.shape[0]
        r_q = q.reshape(Bq, H, W, head_dim)
        rel_h = jnp.einsum('bhwc,hkc->bhwk', r_q, Rh)
        rel_w = jnp.einsum('bhwc,wkc->bhwk', r_q, Rw)
        attn = (attn.reshape(Bq, H, W, H, W)
                + rel_h[:, :, :, :, None]
                + rel_w[:, :, :, None, :]).reshape(Bq, H * W, H * W)
    attn = jax.nn.softmax(attn, axis=-1)
    out = (attn @ v).reshape(B, num_heads, H, W, head_dim)
    out = out.transpose(0, 2, 3, 1, 4).reshape(B, H, W, dim)
    return out @ w_proj.T + b_proj


# ----------------------------------------------------------------------------
if __name__ == "__main__":
    # Small config consistent with the module: dim=32, num_heads=4, H=W=8, B=2.
    B, H, W, dim = 2, 8, 8, 32
    num_heads = 4
    head_dim = dim // num_heads

    key = jax.random.PRNGKey(0)
    kx, k1, k2, k3, k4, k5, k6 = jax.random.split(key, 7)

    x = jax.random.normal(kx, (B, H, W, dim), jnp.float32)
    w_qkv = 0.05 * jax.random.normal(k1, (3 * dim, dim), jnp.float32)
    b_qkv = 0.05 * jax.random.normal(k2, (3 * dim,), jnp.float32)
    w_proj = 0.05 * jax.random.normal(k3, (dim, dim), jnp.float32)
    b_proj = 0.05 * jax.random.normal(k4, (dim,), jnp.float32)
    rel_pos_h = 0.1 * jax.random.normal(k5, (2 * H - 1, head_dim), jnp.float32)
    rel_pos_w = 0.1 * jax.random.normal(k6, (2 * W - 1, head_dim), jnp.float32)

    # Tolerance is slightly loose because softmax normalization uses the TPU
    # EUP approximate reciprocal (pl.reciprocal(..., approx=True)).
    TOL = 5e-3

    for use_rel_pos in (True, False):
        out = multi_head_attn_pallas(
            x, w_qkv, b_qkv, w_proj, b_proj, rel_pos_h, rel_pos_w,
            num_heads=num_heads, use_rel_pos=use_rel_pos)
        out = jax.block_until_ready(out)

        ref = multi_head_attn_ref(
            x, w_qkv, b_qkv, w_proj, b_proj, rel_pos_h, rel_pos_w,
            num_heads=num_heads, use_rel_pos=use_rel_pos)
        ref = jax.block_until_ready(ref)

        if not np.allclose(np.asarray(out), np.asarray(ref), rtol=TOL, atol=TOL):
            raise AssertionError(
                f"Pallas output does not match reference (use_rel_pos={use_rel_pos})")

    print("KERNEL_OK")
</pallas_src>

<mosaic_0001>
module attributes {stable_mosaic.version = 11 : i64} {
  func.func @_linear_kernel(%arg0: i32, %arg1: memref<128x32xf32, #tpu.memory_space<vmem>>, %arg2: memref<96x32xf32, #tpu.memory_space<vmem>>, %arg3: memref<1x96xf32, #tpu.memory_space<vmem>>, %arg4: memref<128x96xf32, #tpu.memory_space<vmem>>) attributes {dimension_semantics = [#tpu.dimension_semantics<parallel>], iteration_bounds = array<i64: 1>, scalar_prefetch = 0 : i64, scratch_operands = 0 : i64, tpu.core_type = #tpu.core_type<tc>, window_params = [{transform_indices = @transform_0, window_bounds = array<i64: 128, 32>}, {pipeline_mode = #tpu.pipeline_mode<synchronous>, transform_indices = @transform_1, window_bounds = array<i64: 96, 32>}, {pipeline_mode = #tpu.pipeline_mode<synchronous>, transform_indices = @transform_2, window_bounds = array<i64: 1, 96>}, {transform_indices = @transform_3, window_bounds = array<i64: 128, 96>}]} {
    %c0 = arith.constant 0 : index
    %c0_0 = arith.constant 0 : index
    %0 = vector.load %arg1[%c0, %c0_0] : memref<128x32xf32, #tpu.memory_space<vmem>>, vector<128x32xf32>
    %c0_1 = arith.constant 0 : index
    %c0_2 = arith.constant 0 : index
    %1 = vector.load %arg2[%c0_1, %c0_2] : memref<96x32xf32, #tpu.memory_space<vmem>>, vector<96x32xf32>
    %cst = arith.constant dense<0.000000e+00> : vector<128x96xf32>
    %2 = tpu.matmul %0, %1, %cst {dimension_numbers = #tpu.dot_dimension_numbers<[1], [1], [0], [0], [0, 0, 1, 0], [], []>} : vector<128x32xf32>, vector<96x32xf32>, vector<128x96xf32> -> vector<128x96xf32>
    %c0_3 = arith.constant 0 : index
    %c0_4 = arith.constant 0 : index
    %3 = vector.load %arg3[%c0_3, %c0_4] : memref<1x96xf32, #tpu.memory_space<vmem>>, vector<1x96xf32>
    %4 = vector.broadcast %3 : vector<1x96xf32> to vector<128x96xf32>
    %5 = arith.addf %2, %4 : vector<128x96xf32>
    %c0_5 = arith.constant 0 : index
    %c0_6 = arith.constant 0 : index
    %6 = vector.load %arg4[%c0_5, %c0_6] : memref<128x96xf32, #tpu.memory_space<vmem>>, vector<128x96xf32>
    tpu.vector_store %arg4[%c0_5, %c0_6], %5 {strides = array<i32>} : memref<128x96xf32, #tpu.memory_space<vmem>>, vector<128x96xf32>,
    return
  }
  func.func @transform_0(%arg0: i32) -> (i32, i32) {
    %c0_i32 = arith.constant 0 : i32
    %c0_i32_0 = arith.constant 0 : i32
    return %arg0, %c0_i32 : i32, i32
  }
  func.func @transform_1(%arg0: i32) -> (i32, i32) {
    %c0_i32 = arith.constant 0 : i32
    %c0_i32_0 = arith.constant 0 : i32
    %c0_i32_1 = arith.constant 0 : i32
    return %c0_i32, %c0_i32_0 : i32, i32
  }
  func.func @transform_2(%arg0: i32) -> (i32, i32) {
    %c0_i32 = arith.constant 0 : i32
    %c0_i32_0 = arith.constant 0 : i32
    %c0_i32_1 = arith.constant 0 : i32
    return %c0_i32, %c0_i32_0 : i32, i32
  }
  func.func @transform_3(%arg0: i32) -> (i32, i32) {
    %c0_i32 = arith.constant 0 : i32
    %c0_i32_0 = arith.constant 0 : i32
    return %arg0, %c0_i32 : i32, i32
  }
}

</mosaic_0001>

<bundles_post_ra>
// kernel: tpu_custom_call.1
= control target key start
LH: loop header
LB: loop body
LE: loop exit
PB: predicated region body
PF: predicated region fallthrough
CT: control target
= control target key end

     0   :  { %vm46_vm0 = vcmask 261120   ;;  %vm196_vm1 = vcmask 785408   ;;  %s517_s1 = inlined_call_operand.vmem [shape: f32[96,32], index: 1, kind: input, shape index: {}]   ;;  %s518_s2 = inlined_call_operand.vmem [shape: f32[1,96], index: 2, kind: input, shape index: {}]   ;;  %s519_s0 = inlined_call_operand.vmem [shape: f32[128,32], index: 0, kind: input, shape index: {}]   ;;  %s520_s3 = inlined_call_operand.vmem [shape: f32[128,96], index: 3, kind: output, shape index: {}]  }
   0x1   :  { %v41_v0 = vld [vmem:[%s517_s1 + $0x58] sm:$0xff]  ;;  %v40_v1 = vld [vmem:[%s517_s1 + $0x50] sm:$0xff]  ;;  %v39_v2 = vld [vmem:[%s517_s1 + $0x48] sm:$0xff] }
   0x2   :  { %246 = vmatpush.xpose.msk.msra.mxu2 %vm46_vm0, %v41_v0  ;;  %247 = vmatpush.xpose.msk.msra.mxu3 %vm46_vm0, %v41_v0  ;;  %v38_v3 = vld [vmem:[%s517_s1 + $0x40] sm:$0xff]  ;;  %v37_v4 = vld [vmem:[%s517_s1 + $0x38] sm:$0xff]  ;;  %v36_v5 = vld [vmem:[%s517_s1 + $0x30] sm:$0xff] }
   0x3   :  { %217 = vmatpush.xpose.msk.msra.mxu0 %vm46_vm0, %v41_v0  ;;  %245 = vmatpush.xpose.msk.msra.mxu1 %vm46_vm0, %v41_v0  ;;  %v35_v6 = vld [vmem:[%s517_s1 + $0x28] sm:$0xff]  ;;  %v34_v7 = vld [vmem:[%s517_s1 + $0x20] sm:$0xff]  ;;  %v33_v8 = vld [vmem:[%s517_s1 + $0x18] sm:$0xff] }
   0x4   :  { %v32_v9 = vld [vmem:[%s517_s1 + $0x10] sm:$0xff]  ;;  %v31_v10 = vld [vmem:[%s517_s1 + $0x8] sm:$0xff]  ;;  %v30_v11 = vld [vmem:[%s517_s1] sm:$0xff] }
   0x5   :  { %v22_v12 = vld [vmem:[%s519_s0 + $0x40] sm:$0xff]  ;;  %v23_v16 = vld [vmem:[%s519_s0 + $0x48] sm:$0xff]  ;;  %v24_v20 = vld [vmem:[%s519_s0 + $0x50] sm:$0xff] }
   0x6   :  { %249 = vmatpush.xpose.msk.msra.mxu2 %vm46_vm0, %v40_v1  ;;  %250 = vmatpush.xpose.msk.msra.mxu3 %vm46_vm0, %v40_v1  ;;  %v26_v13 = vld [vmem:[%s519_s0 + $0x60] sm:$0xff]  ;;  %v27_v17 = vld [vmem:[%s519_s0 + $0x68] sm:$0xff]  ;;  %v28_v21 = vld [vmem:[%s519_s0 + $0x70] sm:$0xff] }
   0x7   :  { %218 = vmatpush.xpose.msk.msra.mxu0 %vm46_vm0, %v40_v1  ;;  %248 = vmatpush.xpose.msk.msra.mxu1 %vm46_vm0, %v40_v1  ;;  %v14_v14 = vld [vmem:[%s519_s0] sm:$0xff]  ;;  %v15_v18 = vld [vmem:[%s519_s0 + $0x8] sm:$0xff]  ;;  %v16_v22 = vld [vmem:[%s519_s0 + $0x10] sm:$0xff] }
   0x8   :  { %v18_v15 = vld [vmem:[%s519_s0 + $0x20] sm:$0xff]  ;;  %v19_v19 = vld [vmem:[%s519_s0 + $0x28] sm:$0xff]  ;;  %v20_v23 = vld [vmem:[%s519_s0 + $0x30] sm:$0xff] }
   0x9   :  { %v25_v24 = vld [vmem:[%s519_s0 + $0x58] sm:$0xff]  ;;  %v281_v28 = vld [vmem:[%s518_s2] ss:$0 sm:$0xff] }
   0xa   :  { %252 = vmatpush.xpose.msk.msra.mxu2 %vm46_vm0, %v39_v2  ;;  %253 = vmatpush.xpose.msk.msra.mxu3 %vm46_vm0, %v39_v2  ;;  %v29_v25 = vld [vmem:[%s519_s0 + $0x78] sm:$0xff] }
   0xb   :  { %219 = vmatpush.xpose.msk.msra.mxu0 %vm46_vm0, %v39_v2  ;;  %251 = vmatpush.xpose.msk.msra.mxu1 %vm46_vm0, %v39_v2  ;;  %v17_v26 = vld [vmem:[%s519_s0 + $0x18] sm:$0xff] }
   0xc   :  { %v21_v27 = vld [vmem:[%s519_s0 + $0x38] sm:$0xff] }
   0xe   :  { %255 = vmatpush.xpose.msk.msra.mxu2 %vm46_vm0, %v38_v3  ;;  %256 = vmatpush.xpose.msk.msra.mxu3 %vm46_vm0, %v38_v3 }
   0xf   :  { %220 = vmatpush.xpose.msk.msra.mxu0 %vm46_vm0, %v38_v3  ;;  %254 = vmatpush.xpose.msk.msra.mxu1 %vm46_vm0, %v38_v3 }
  0x12   :  { %258 = vmatpush.xpose.msk.msra.mxu2 %vm46_vm0, %v37_v4  ;;  %259 = vmatpush.xpose.msk.msra.mxu3 %vm46_vm0, %v37_v4 }
  0x13   :  { %221 = vmatpush.xpose.msk.msra.mxu0 %vm46_vm0, %v37_v4  ;;  %257 = vmatpush.xpose.msk.msra.mxu1 %vm46_vm0, %v37_v4 }
  0x16   :  { %261 = vmatpush.xpose.msk.msra.mxu2 %vm46_vm0, %v36_v5  ;;  %262 = vmatpush.xpose.msk.msra.mxu3 %vm46_vm0, %v36_v5 }
  0x17   :  { %222 = vmatpush.xpose.msk.msra.mxu0 %vm46_vm0, %v36_v5  ;;  %260 = vmatpush.xpose.msk.msra.mxu1 %vm46_vm0, %v36_v5 }
  0x1a   :  { %264 = vmatpush.xpose.msk.msra.mxu2 %vm46_vm0, %v35_v6  ;;  %265 = vmatpush.xpose.msk.msra.mxu3 %vm46_vm0, %v35_v6 }
  0x1b   :  { %223 = vmatpush.xpose.msk.msra.mxu0 %vm46_vm0, %v35_v6  ;;  %263 = vmatpush.xpose.msk.msra.mxu1 %vm46_vm0, %v35_v6 }
  0x1e   :  { %267 = vmatpush.xpose.msk.msra.mxu2 %vm46_vm0, %v34_v7  ;;  %268 = vmatpush.xpose.msk.msra.mxu3 %vm46_vm0, %v34_v7 }
  0x1f   :  { %224 = vmatpush.xpose.msk.msra.mxu0 %vm46_vm0, %v34_v7  ;;  %266 = vmatpush.xpose.msk.msra.mxu1 %vm46_vm0, %v34_v7 }
  0x22   :  { %270 = vmatpush.xpose.msk.msra.mxu2 %vm46_vm0, %v33_v8  ;;  %271 = vmatpush.xpose.msk.msra.mxu3 %vm46_vm0, %v33_v8 }
  0x23   :  { %225 = vmatpush.xpose.msk.msra.mxu0 %vm46_vm0, %v33_v8  ;;  %269 = vmatpush.xpose.msk.msra.mxu1 %vm46_vm0, %v33_v8 }
  0x26   :  { %273 = vmatpush.xpose.msk.msra.mxu2 %vm46_vm0, %v32_v9  ;;  %274 = vmatpush.xpose.msk.msra.mxu3 %vm46_vm0, %v32_v9 }
  0x27   :  { %226 = vmatpush.xpose.msk.msra.mxu0 %vm46_vm0, %v32_v9  ;;  %272 = vmatpush.xpose.msk.msra.mxu1 %vm46_vm0, %v32_v9 }
  0x2a   :  { %276 = vmatpush.xpose.msk.msra.mxu2 %vm46_vm0, %v31_v10  ;;  %277 = vmatpush.xpose.msk.msra.mxu3 %vm46_vm0, %v31_v10 }
  0x2b   :  { %227 = vmatpush.xpose.msk.msra.mxu0 %vm46_vm0, %v31_v10  ;;  %275 = vmatpush.xpose.msk.msra.mxu1 %vm46_vm0, %v31_v10 }
  0x2e   :  { %279 = vmatpush.xpose.msk.msra.mxu2 %vm46_vm0, %v30_v11  ;;  %280 = vmatpush.xpose.msk.msra.mxu3 %vm46_vm0, %v30_v11 }
  0x2f   :  { %228 = vmatpush.xpose.msk.msra.mxu0 %vm46_vm0, %v30_v11  ;;  %278 = vmatpush.xpose.msk.msra.mxu1 %vm46_vm0, %v30_v11 }
  0x31   :  { %237 = vmatmul.msk.f32.vlgmr.msra.gmra.mxu2 %vm46_vm0, %v22_v12  ;;  %241 = vmatmul.msk.f32.vlgmr.msra.gmra.mxu3 %vm46_vm0, %v26_v13 }
  0x32   :  { %229 = vmatmul.msk.f32.vlgmr.msra.gmra.mxu0 %vm46_vm0, %v14_v14  ;;  %233 = vmatmul.msk.f32.vlgmr.msra.gmra.mxu1 %vm46_vm0, %v18_v15 }
  0x39   :  { %238 = vmatmul.msk.f32.gmra.mxu2 %vm46_vm0, %v23_v16  ;;  %242 = vmatmul.msk.f32.gmra.mxu3 %vm46_vm0, %v27_v17 }
  0x3a   :  { %230 = vmatmul.msk.f32.gmra.mxu0 %vm46_vm0, %v15_v18  ;;  %234 = vmatmul.msk.f32.gmra.mxu1 %vm46_vm0, %v19_v19 }
  0x41   :  { %239 = vmatmul.msk.f32.gmra.mxu2 %vm46_vm0, %v24_v20  ;;  %243 = vmatmul.msk.f32.gmra.mxu3 %vm46_vm0, %v28_v21 }
  0x42   :  { %231 = vmatmul.msk.f32.gmra.mxu0 %vm46_vm0, %v16_v22  ;;  %235 = vmatmul.msk.f32.gmra.mxu1 %vm46_vm0, %v20_v23 }
  0x49   :  { %240 = vmatmul.msk.f32.gmra.mxu2 %vm46_vm0, %v25_v24  ;;  %244 = vmatmul.msk.f32.gmra.mxu3 %vm46_vm0, %v29_v25 }
  0x4a   :  { %232 = vmatmul.msk.f32.gmra.mxu0 %vm46_vm0, %v17_v26  ;;  %236 = vmatmul.msk.f32.gmra.mxu1 %vm46_vm0, %v21_v27 }
  0xaf   :  { %v148_v29 = vpop.f32.mrf.mxu0  ;;  %v160_v30 = vpop.f32.mrf.mxu1 }
  0xb0   :  { %v149_v31 = vadd.f32 %v281_v28, %v148_v29  ;;  %v161_v32 = vadd.f32 %v281_v28, %v160_v30 }
  0xb2   :  { %197 = vst.msk [vmem:[%s520_s3] sm:$0xff] %vm196_vm1, %v149_v31 }
  0xb3   :  { %201 = vst.msk [vmem:[%s520_s3 + $0x20] sm:$0xff] %vm196_vm1, %v161_v32 }
  0xb4   :  { %v172_v33 = vpop.f32.mrf.mxu2  ;;  %v184_v34 = vpop.f32.mrf.mxu3 }
  0xb5   :  { %v173_v35 = vadd.f32 %v281_v28, %v172_v33  ;;  %v185_v36 = vadd.f32 %v281_v28, %v184_v34 }
  0xb7   :  { %205 = vst.msk [vmem:[%s520_s3 + $0x40] sm:$0xff] %vm196_vm1, %v173_v35  ;;  %v151_v37 = vpop.f32.mrf.mxu0  ;;  %v163_v38 = vpop.f32.mrf.mxu1 }
  0xb8   :  { %209 = vst.msk [vmem:[%s520_s3 + $0x60] sm:$0xff] %vm196_vm1, %v185_v36  ;;  %v152_v39 = vadd.f32 %v281_v28, %v151_v37  ;;  %v164_v40 = vadd.f32 %v281_v28, %v163_v38 }
  0xba   :  { %198 = vst.msk [vmem:[%s520_s3 + $0x8] sm:$0xff] %vm196_vm1, %v152_v39 }
  0xbb   :  { %202 = vst.msk [vmem:[%s520_s3 + $0x28] sm:$0xff] %vm196_vm1, %v164_v40 }
  0xbc   :  { %v175_v41 = vpop.f32.mrf.mxu2  ;;  %v187_v42 = vpop.f32.mrf.mxu3 }
  0xbd   :  { %v176_v43 = vadd.f32 %v281_v28, %v175_v41  ;;  %v188_v44 = vadd.f32 %v281_v28, %v187_v42 }
  0xbf   :  { %206 = vst.msk [vmem:[%s520_s3 + $0x48] sm:$0xff] %vm196_vm1, %v176_v43  ;;  %v154_v45 = vpop.f32.mrf.mxu0  ;;  %v166_v46 = vpop.f32.mrf.mxu1 }
  0xc0   :  { %210 = vst.msk [vmem:[%s520_s3 + $0x68] sm:$0xff] %vm196_vm1, %v188_v44  ;;  %v155_v47 = vadd.f32 %v281_v28, %v154_v45  ;;  %v167_v48 = vadd.f32 %v281_v28, %v166_v46 }
  0xc2   :  { %199 = vst.msk [vmem:[%s520_s3 + $0x10] sm:$0xff] %vm196_vm1, %v155_v47 }
  0xc3   :  { %203 = vst.msk [vmem:[%s520_s3 + $0x30] sm:$0xff] %vm196_vm1, %v167_v48 }
  0xc4   :  { %v178_v49 = vpop.f32.mrf.mxu2  ;;  %v190_v50 = vpop.f32.mrf.mxu3 }
  0xc5   :  { %v179_v51 = vadd.f32 %v281_v28, %v178_v49  ;;  %v191_v52 = vadd.f32 %v281_v28, %v190_v50 }
  0xc7   :  { %207 = vst.msk [vmem:[%s520_s3 + $0x50] sm:$0xff] %vm196_vm1, %v179_v51  ;;  %v157_v53 = vpop.f32.mrf.mxu0  ;;  %v169_v54 = vpop.f32.mrf.mxu1 }
  0xc8   :  { %211 = vst.msk [vmem:[%s520_s3 + $0x70] sm:$0xff] %vm196_vm1, %v191_v52  ;;  %v158_v55 = vadd.f32 %v281_v28, %v157_v53  ;;  %v170_v56 = vadd.f32 %v281_v28, %v169_v54 }
  0xca   :  { %200 = vst.msk [vmem:[%s520_s3 + $0x18] sm:$0xff] %vm196_vm1, %v158_v55 }
  0xcb   :  { %204 = vst.msk [vmem:[%s520_s3 + $0x38] sm:$0xff] %vm196_vm1, %v170_v56 }
  0xcc   :  { %v181_v57 = vpop.f32.mrf.mxu2  ;;  %v193_v58 = vpop.f32.mrf.mxu3 }
  0xcd   :  { %v182_v59 = vadd.f32 %v281_v28, %v181_v57  ;;  %v194_v60 = vadd.f32 %v281_v28, %v193_v58 }
  0xcf   :  { %208 = vst.msk [vmem:[%s520_s3 + $0x58] sm:$0xff] %vm196_vm1, %v182_v59 }
  0xd0   :  { %212 = vst.msk [vmem:[%s520_s3 + $0x78] sm:$0xff] %vm196_vm1, %v194_v60 }

</bundles_post_ra>
